<compile_context>
chip_gen: v7x
topology: tpu7x:2x2x1
jax: 0.10.0
libtpu: 0.0.40
codegen_flags: <defaults>
</compile_context>

<pallas_src>
import jax
import jax.numpy as jnp
from jax.experimental import pallas as pl
from jax.experimental.pallas import tpu as pltpu


# --------------------------------------------------------------------------
# Tile sizing helpers (padded-byte aware)
# --------------------------------------------------------------------------

def _round_up(x, m):
    return (x + m - 1) // m * m


def _sublane_tile(dtype):
    # 8 sublanes for 4-byte dtypes, 16 for 2-byte, 32 for 1-byte.
    return max(8, 32 // jnp.dtype(dtype).itemsize)


def _pick_spatial_tile(S, cin, cout_blk, dtype,
                       tile_bytes_target=2 * 1024 * 1024,
                       min_tile=512, max_tile=16384, min_steps=4):
    """Multiple-of-128 spatial tile for the (N, Cin, S) MXU path.

    Sized from *padded* VMEM bytes (channel dims round up to the sublane tile)
    and capped so each image gets >= min_steps grid steps for pipeline overlap.
    """
    itemsize = jnp.dtype(dtype).itemsize
    sub = _sublane_tile(dtype)
    # Padded bytes per lane (spatial element) for one x tile + one out tile.
    per_lane = (_round_up(cin, sub) + _round_up(cout_blk, sub)) * itemsize
    ts = tile_bytes_target // max(per_lane, 1)
    ts = min(ts, max(min_tile, S // min_steps))     # keep the pipeline streaming
    ts = max(min_tile, min(ts, max_tile))
    ts = max(128, (ts // 128) * 128)
    if ts >= S:
        return S            # single full-extent block is always a legal shape
    return ts


def _pick_row_tile(S128, cin, cout, dtype,
                   tile_bytes_target=2 * 1024 * 1024, min_steps=4):
    """Row tile (multiple of the sublane tile) for the (N, C, S//128, 128) slab path."""
    itemsize = jnp.dtype(dtype).itemsize
    sub = _sublane_tile(dtype)
    if S128 <= sub:
        return S128         # full extent: always legal, nothing to pipeline anyway
    per_row = (cin + cout) * 128 * itemsize         # dense slabs: no channel padding
    tr = tile_bytes_target // max(per_row, 1)
    tr = min(tr, max(sub, S128 // min_steps))
    tr = max(sub, (tr // sub) * sub)
    return min(tr, S128)


# --------------------------------------------------------------------------
# Kernels
# --------------------------------------------------------------------------

def _slab_kernel(x_ref, w_ref, b_ref, o_ref):
    """Tiny-channel VPU path.

    x_ref: (1, Cin, tr, 128) VMEM (input dtype)
    w_ref: (Cout, Cin) SMEM f32     b_ref: (Cout,) SMEM f32
    o_ref: (1, Cout, tr, 128) VMEM
    """
    cout, cin = w_ref.shape
    tr, lanes = o_ref.shape[2], o_ref.shape[3]
    # Accumulators start from the bias (saves a final add) in f32.
    accs = [jnp.full((tr, lanes), b_ref[o], jnp.float32) for o in range(cout)]
    for c in range(cin):                       # static, tiny trip counts
        xc = x_ref[0, c].astype(jnp.float32)   # dense (tr, 128) slab, loaded once
        for o in range(cout):
            accs[o] = accs[o] + w_ref[o, c] * xc   # scalar-splat FMA on the VPU
    for o in range(cout):
        o_ref[0, o] = accs[o].astype(o_ref.dtype)


def _mxu_kernel(x_ref, w_ref, b_ref, o_ref):
    """General path: (tco, Cin) @ (Cin, ts) on the MXU, f32 accumulation."""
    acc = jnp.dot(w_ref[...], x_ref[0], preferred_element_type=jnp.float32)
    o_ref[0] = (acc + b_ref[...]).astype(o_ref.dtype)


# --------------------------------------------------------------------------
# pallas_call wrappers
# --------------------------------------------------------------------------

def _outconv_slab(x4, w_f32, b_f32):
    """x4: (N, Cin, S//128, 128), w: (Cout, Cin) f32, b: (Cout,) f32."""
    N, Cin, S128, L = x4.shape
    Cout = w_f32.shape[0]
    itemsize = jnp.dtype(x4.dtype).itemsize
    tr = _pick_row_tile(S128, Cin, Cout, x4.dtype)
    grid = (N, pl.cdiv(S128, tr))               # both axes independent -> parallel

    cost = pl.CostEstimate(
        flops=2 * N * S128 * L * Cin * Cout,
        transcendentals=0,
        bytes_accessed=(N * (Cin + Cout) * S128 * L) * itemsize + (Cin * Cout + Cout) * 4,
    )
    return pl.pallas_call(
        _slab_kernel,
        out_shape=jax.ShapeDtypeStruct((N, Cout, S128, L), x4.dtype),
        grid=grid,
        in_specs=[
            pl.BlockSpec((1, Cin, tr, L), lambda n, s: (n, 0, s, 0)),
            pl.BlockSpec(memory_space=pltpu.MemorySpace.SMEM),   # weights (scalars)
            pl.BlockSpec(memory_space=pltpu.MemorySpace.SMEM),   # bias (scalars)
        ],
        out_specs=pl.BlockSpec((1, Cout, tr, L), lambda n, s: (n, 0, s, 0)),
        compiler_params=pltpu.CompilerParams(
            dimension_semantics=("parallel", "parallel"),
            vmem_limit_bytes=32 * 1024 * 1024,     # v7x-safe; tiles sized well below
        ),
        cost_estimate=cost,
    )(x4, w_f32, b_f32)


def _outconv_mxu(x3, w_mat, b_col):
    """x3: (N, Cin, S), w: (Cout, Cin) in x dtype, b: (Cout, 1) f32."""
    N, Cin, S = x3.shape
    Cout = w_mat.shape[0]
    itemsize = jnp.dtype(x3.dtype).itemsize

    tco = Cout if Cout <= 256 else 256           # MXU-width Cout tiles for wide heads
    ts = _pick_spatial_tile(S, Cin, tco, x3.dtype)
    # Cout axis innermost: activation block index (n, 0, s) is unchanged across
    # consecutive Cout steps, so only the small weight/bias tiles stream.
    grid = (N, pl.cdiv(S, ts), pl.cdiv(Cout, tco))

    cost = pl.CostEstimate(
        flops=2 * N * S * Cin * Cout,
        transcendentals=0,
        bytes_accessed=(N * (Cin + Cout) * S + Cin * Cout + Cout) * itemsize,
    )
    return pl.pallas_call(
        _mxu_kernel,
        out_shape=jax.ShapeDtypeStruct((N, Cout, S), x3.dtype),
        grid=grid,
        in_specs=[
            pl.BlockSpec((1, Cin, ts), lambda n, s, co: (n, 0, s)),   # activations
            pl.BlockSpec((tco, Cin), lambda n, s, co: (co, 0)),       # weight tile
            pl.BlockSpec((tco, 1), lambda n, s, co: (co, 0)),         # bias tile
        ],
        out_specs=pl.BlockSpec((1, tco, ts), lambda n, s, co: (n, co, s)),
        compiler_params=pltpu.CompilerParams(
            dimension_semantics=("parallel", "parallel", "parallel"),
            vmem_limit_bytes=32 * 1024 * 1024,
        ),
        cost_estimate=cost,
    )(x3, w_mat, b_col)


def out_conv(x_nchw, weight, bias, *, vpu_cost_threshold=64):
    """Equivalent of nn.Conv2d(in_channels, out_channels, kernel_size=1).

    x_nchw: (N, Cin, H, W)
    weight: (Cout, Cin, 1, 1)  -- PyTorch conv weight layout
    bias:   (Cout,)
    returns (N, Cout, H, W)
    """
    N, Cin, H, W = x_nchw.shape
    Cout = weight.shape[0]
    S = H * W
    w_mat = weight.reshape(Cout, Cin)

    # Tiny heads (typical OutConv: a handful of classes) -> dense-slab VPU path
    # (no MXU padding waste, no sublane padding of the channel dims).  Anything
    # larger -- or spatial sizes that are not a multiple of 128 -- uses the MXU.
    if (Cin * Cout <= vpu_cost_threshold) and (S % 128 == 0):
        x4 = x_nchw.reshape(N, Cin, S // 128, 128)        # free contiguous view
        y = _outconv_slab(x4, w_mat.astype(jnp.float32), bias.astype(jnp.float32))
        return y.reshape(N, Cout, H, W)

    x3 = x_nchw.reshape(N, Cin, S)                         # free contiguous view
    y = _outconv_mxu(x3, w_mat.astype(x_nchw.dtype),
                     bias.astype(jnp.float32).reshape(Cout, 1))
    return y.reshape(N, Cout, H, W)


# --------------------------------------------------------------------------
# Self-test
# --------------------------------------------------------------------------

if __name__ == "__main__":
    key = jax.random.PRNGKey(0)
    kx, kw, kb, kx2, kw2, kb2 = jax.random.split(key, 6)

    # --- Primary check: tiny OutConv head (VPU slab path) --------------------
    N, Cin, Cout, H, W = 2, 4, 3, 16, 16
    x = jax.random.normal(kx, (N, Cin, H, W), dtype=jnp.float32)
    bound = 1.0 / (Cin ** 0.5)      # PyTorch-style kaiming-uniform-like bound
    weight = jax.random.uniform(kw, (Cout, Cin, 1, 1), jnp.float32, -bound, bound)
    bias = jax.random.uniform(kb, (Cout,), jnp.float32, -bound, bound)

    y = jax.block_until_ready(out_conv(x, weight, bias))
    ref = (jnp.einsum("nchw,oc->nohw", x, weight.reshape(Cout, Cin),
                      precision=jax.lax.Precision.HIGHEST)
           + bias[None, :, None, None])
    assert y.shape == (N, Cout, H, W)
    assert jnp.allclose(y, ref, atol=1e-5, rtol=1e-5)

    # --- Secondary check: wider channels + ragged spatial (MXU path, masked tail)
    N2, Cin2, Cout2, H2, W2 = 1, 24, 40, 10, 13           # S = 130, not % 128
    x2 = jax.random.normal(kx2, (N2, Cin2, H2, W2), dtype=jnp.float32)
    bnd2 = 1.0 / (Cin2 ** 0.5)
    weight2 = jax.random.uniform(kw2, (Cout2, Cin2, 1, 1), jnp.float32, -bnd2, bnd2)
    bias2 = jax.random.uniform(kb2, (Cout2,), jnp.float32, -bnd2, bnd2)

    y2 = jax.block_until_ready(out_conv(x2, weight2, bias2))
    ref2 = (jnp.einsum("nchw,oc->nohw", x2, weight2.reshape(Cout2, Cin2),
                       precision=jax.lax.Precision.HIGHEST)
            + bias2[None, :, None, None])
    assert y2.shape == (N2, Cout2, H2, W2)
    assert jnp.allclose(y2, ref2, atol=5e-3, rtol=5e-3)

    print("KERNEL_OK")
</pallas_src>

<mosaic_0001>
module attributes {stable_mosaic.version = 11 : i64} {
  func.func @_slab_kernel(%arg0: i32, %arg1: i32, %arg2: memref<1x4x2x128xf32, #tpu.memory_space<vmem>>, %arg3: memref<3x4xf32, #tpu.memory_space<smem>>, %arg4: memref<3xf32, #tpu.memory_space<smem>>, %arg5: memref<1x3x2x128xf32, #tpu.memory_space<vmem>>) attributes {dimension_semantics = [#tpu.dimension_semantics<parallel>, #tpu.dimension_semantics<parallel>], iteration_bounds = array<i64: 2, 1>, scalar_prefetch = 0 : i64, scratch_operands = 0 : i64, tpu.core_type = #tpu.core_type<tc>, window_params = [{transform_indices = @transform_0, window_bounds = array<i64: 1, 4, 2, 128>}, {transform_indices = @transform_1, window_bounds = array<i64: 3, 4>}, {transform_indices = @transform_2, window_bounds = array<i64: 3>}, {transform_indices = @transform_3, window_bounds = array<i64: 1, 3, 2, 128>}]} {
    %c0 = arith.constant 0 : index
    %0 = memref.load %arg4[%c0] : memref<3xf32, #tpu.memory_space<smem>>
    %1 = vector.broadcast %0 : f32 to vector<2x128xf32>
    %c1 = arith.constant 1 : index
    %2 = memref.load %arg4[%c1] : memref<3xf32, #tpu.memory_space<smem>>
    %3 = vector.broadcast %2 : f32 to vector<2x128xf32>
    %c2 = arith.constant 2 : index
    %4 = memref.load %arg4[%c2] : memref<3xf32, #tpu.memory_space<smem>>
    %5 = vector.broadcast %4 : f32 to vector<2x128xf32>
    %c0_0 = arith.constant 0 : index
    %c0_1 = arith.constant 0 : index
    %c0_2 = arith.constant 0 : index
    %c0_3 = arith.constant 0 : index
    %6 = vector.load %arg2[%c0_0, %c0_1, %c0_2, %c0_3] : memref<1x4x2x128xf32, #tpu.memory_space<vmem>>, vector<1x1x2x128xf32>
    %7 = vector.shape_cast %6 : vector<1x1x2x128xf32> to vector<2x128xf32>
    %c0_4 = arith.constant 0 : index
    %c0_5 = arith.constant 0 : index
    %8 = memref.load %arg3[%c0_4, %c0_5] : memref<3x4xf32, #tpu.memory_space<smem>>
    %9 = vector.broadcast %8 : f32 to vector<2x128xf32>
    %10 = arith.mulf %9, %7 : vector<2x128xf32>
    %11 = arith.addf %1, %10 : vector<2x128xf32>
    %c1_6 = arith.constant 1 : index
    %c0_7 = arith.constant 0 : index
    %12 = memref.load %arg3[%c1_6, %c0_7] : memref<3x4xf32, #tpu.memory_space<smem>>
    %13 = vector.broadcast %12 : f32 to vector<2x128xf32>
    %14 = arith.mulf %13, %7 : vector<2x128xf32>
    %15 = arith.addf %3, %14 : vector<2x128xf32>
    %c2_8 = arith.constant 2 : index
    %c0_9 = arith.constant 0 : index
    %16 = memref.load %arg3[%c2_8, %c0_9] : memref<3x4xf32, #tpu.memory_space<smem>>
    %17 = vector.broadcast %16 : f32 to vector<2x128xf32>
    %18 = arith.mulf %17, %7 : vector<2x128xf32>
    %19 = arith.addf %5, %18 : vector<2x128xf32>
    %c0_10 = arith.constant 0 : index
    %c1_11 = arith.constant 1 : index
    %c0_12 = arith.constant 0 : index
    %c0_13 = arith.constant 0 : index
    %20 = vector.load %arg2[%c0_10, %c1_11, %c0_12, %c0_13] : memref<1x4x2x128xf32, #tpu.memory_space<vmem>>, vector<1x1x2x128xf32>
    %21 = vector.shape_cast %20 : vector<1x1x2x128xf32> to vector<2x128xf32>
    %c0_14 = arith.constant 0 : index
    %c1_15 = arith.constant 1 : index
    %22 = memref.load %arg3[%c0_14, %c1_15] : memref<3x4xf32, #tpu.memory_space<smem>>
    %23 = vector.broadcast %22 : f32 to vector<2x128xf32>
    %24 = arith.mulf %23, %21 : vector<2x128xf32>
    %25 = arith.addf %11, %24 : vector<2x128xf32>
    %c1_16 = arith.constant 1 : index
    %c1_17 = arith.constant 1 : index
    %26 = memref.load %arg3[%c1_16, %c1_17] : memref<3x4xf32, #tpu.memory_space<smem>>
    %27 = vector.broadcast %26 : f32 to vector<2x128xf32>
    %28 = arith.mulf %27, %21 : vector<2x128xf32>
    %29 = arith.addf %15, %28 : vector<2x128xf32>
    %c2_18 = arith.constant 2 : index
    %c1_19 = arith.constant 1 : index
    %30 = memref.load %arg3[%c2_18, %c1_19] : memref<3x4xf32, #tpu.memory_space<smem>>
    %31 = vector.broadcast %30 : f32 to vector<2x128xf32>
    %32 = arith.mulf %31, %21 : vector<2x128xf32>
    %33 = arith.addf %19, %32 : vector<2x128xf32>
    %c0_20 = arith.constant 0 : index
    %c2_21 = arith.constant 2 : index
    %c0_22 = arith.constant 0 : index
    %c0_23 = arith.constant 0 : index
    %34 = vector.load %arg2[%c0_20, %c2_21, %c0_22, %c0_23] : memref<1x4x2x128xf32, #tpu.memory_space<vmem>>, vector<1x1x2x128xf32>
    %35 = vector.shape_cast %34 : vector<1x1x2x128xf32> to vector<2x128xf32>
    %c0_24 = arith.constant 0 : index
    %c2_25 = arith.constant 2 : index
    %36 = memref.load %arg3[%c0_24, %c2_25] : memref<3x4xf32, #tpu.memory_space<smem>>
    %37 = vector.broadcast %36 : f32 to vector<2x128xf32>
    %38 = arith.mulf %37, %35 : vector<2x128xf32>
    %39 = arith.addf %25, %38 : vector<2x128xf32>
    %c1_26 = arith.constant 1 : index
    %c2_27 = arith.constant 2 : index
    %40 = memref.load %arg3[%c1_26, %c2_27] : memref<3x4xf32, #tpu.memory_space<smem>>
    %41 = vector.broadcast %40 : f32 to vector<2x128xf32>
    %42 = arith.mulf %41, %35 : vector<2x128xf32>
    %43 = arith.addf %29, %42 : vector<2x128xf32>
    %c2_28 = arith.constant 2 : index
    %c2_29 = arith.constant 2 : index
    %44 = memref.load %arg3[%c2_28, %c2_29] : memref<3x4xf32, #tpu.memory_space<smem>>
    %45 = vector.broadcast %44 : f32 to vector<2x128xf32>
    %46 = arith.mulf %45, %35 : vector<2x128xf32>
    %47 = arith.addf %33, %46 : vector<2x128xf32>
    %c0_30 = arith.constant 0 : index
    %c3 = arith.constant 3 : index
    %c0_31 = arith.constant 0 : index
    %c0_32 = arith.constant 0 : index
    %48 = vector.load %arg2[%c0_30, %c3, %c0_31, %c0_32] : memref<1x4x2x128xf32, #tpu.memory_space<vmem>>, vector<1x1x2x128xf32>
    %49 = vector.shape_cast %48 : vector<1x1x2x128xf32> to vector<2x128xf32>
    %c0_33 = arith.constant 0 : index
    %c3_34 = arith.constant 3 : index
    %50 = memref.load %arg3[%c0_33, %c3_34] : memref<3x4xf32, #tpu.memory_space<smem>>
    %51 = vector.broadcast %50 : f32 to vector<2x128xf32>
    %52 = arith.mulf %51, %49 : vector<2x128xf32>
    %53 = arith.addf %39, %52 : vector<2x128xf32>
    %c1_35 = arith.constant 1 : index
    %c3_36 = arith.constant 3 : index
    %54 = memref.load %arg3[%c1_35, %c3_36] : memref<3x4xf32, #tpu.memory_space<smem>>
    %55 = vector.broadcast %54 : f32 to vector<2x128xf32>
    %56 = arith.mulf %55, %49 : vector<2x128xf32>
    %57 = arith.addf %43, %56 : vector<2x128xf32>
    %c2_37 = arith.constant 2 : index
    %c3_38 = arith.constant 3 : index
    %58 = memref.load %arg3[%c2_37, %c3_38] : memref<3x4xf32, #tpu.memory_space<smem>>
    %59 = vector.broadcast %58 : f32 to vector<2x128xf32>
    %60 = arith.mulf %59, %49 : vector<2x128xf32>
    %61 = arith.addf %47, %60 : vector<2x128xf32>
    %c0_39 = arith.constant 0 : index
    %c0_40 = arith.constant 0 : index
    %c0_41 = arith.constant 0 : index
    %c0_42 = arith.constant 0 : index
    %62 = vector.load %arg5[%c0_39, %c0_40, %c0_41, %c0_42] : memref<1x3x2x128xf32, #tpu.memory_space<vmem>>, vector<1x1x2x128xf32>
    %63 = vector.shape_cast %62 : vector<1x1x2x128xf32> to vector<2x128xf32>
    %64 = vector.shape_cast %53 : vector<2x128xf32> to vector<1x1x2x128xf32>
    tpu.vector_store %arg5[%c0_39, %c0_40, %c0_41, %c0_42], %64 {strides = array<i32>} : memref<1x3x2x128xf32, #tpu.memory_space<vmem>>, vector<1x1x2x128xf32>,
    %c0_43 = arith.constant 0 : index
    %c1_44 = arith.constant 1 : index
    %c0_45 = arith.constant 0 : index
    %c0_46 = arith.constant 0 : index
    %65 = vector.load %arg5[%c0_43, %c1_44, %c0_45, %c0_46] : memref<1x3x2x128xf32, #tpu.memory_space<vmem>>, vector<1x1x2x128xf32>
    %66 = vector.shape_cast %65 : vector<1x1x2x128xf32> to vector<2x128xf32>
    %67 = vector.shape_cast %57 : vector<2x128xf32> to vector<1x1x2x128xf32>
    tpu.vector_store %arg5[%c0_43, %c1_44, %c0_45, %c0_46], %67 {strides = array<i32>} : memref<1x3x2x128xf32, #tpu.memory_space<vmem>>, vector<1x1x2x128xf32>,
    %c0_47 = arith.constant 0 : index
    %c2_48 = arith.constant 2 : index
    %c0_49 = arith.constant 0 : index
    %c0_50 = arith.constant 0 : index
    %68 = vector.load %arg5[%c0_47, %c2_48, %c0_49, %c0_50] : memref<1x3x2x128xf32, #tpu.memory_space<vmem>>, vector<1x1x2x128xf32>
    %69 = vector.shape_cast %68 : vector<1x1x2x128xf32> to vector<2x128xf32>
    %70 = vector.shape_cast %61 : vector<2x128xf32> to vector<1x1x2x128xf32>
    tpu.vector_store %arg5[%c0_47, %c2_48, %c0_49, %c0_50], %70 {strides = array<i32>} : memref<1x3x2x128xf32, #tpu.memory_space<vmem>>, vector<1x1x2x128xf32>,
    return
  }
  func.func @transform_0(%arg0: i32, %arg1: i32) -> (i32, i32, i32, i32) {
    %c0_i32 = arith.constant 0 : i32
    %c0_i32_0 = arith.constant 0 : i32
    %c0_i32_1 = arith.constant 0 : i32
    return %arg0, %c0_i32, %arg1, %c0_i32_0 : i32, i32, i32, i32
  }
  func.func @transform_1(%arg0: i32, %arg1: i32) -> (i32, i32) {
    %c0_i32 = arith.constant 0 : i32
    %c0_i32_0 = arith.constant 0 : i32
    %c0_i32_1 = arith.constant 0 : i32
    return %c0_i32, %c0_i32_0 : i32, i32
  }
  func.func @transform_2(%arg0: i32, %arg1: i32) -> i32 {
    %c0_i32 = arith.constant 0 : i32
    %c0_i32_0 = arith.constant 0 : i32
    return %c0_i32 : i32
  }
  func.func @transform_3(%arg0: i32, %arg1: i32) -> (i32, i32, i32, i32) {
    %c0_i32 = arith.constant 0 : i32
    %c0_i32_0 = arith.constant 0 : i32
    %c0_i32_1 = arith.constant 0 : i32
    return %arg0, %c0_i32, %arg1, %c0_i32_0 : i32, i32, i32, i32
  }
}

</mosaic_0001>

<bundles_post_ra>
// kernel: tpu_custom_call.1
= control target key start
LH: loop header
LB: loop body
LE: loop exit
PB: predicated region body
PF: predicated region fallthrough
CT: control target
= control target key end

     0   :  { %8 = vsyncpa [#allocation3], 0  ;;  %s964_s0 = inlined_call_operand.hbm [shape: f32[2,4,2,128], index: 0, kind: input, shape index: {}]   ;;  %s965_s1 = inlined_call_operand.hbm [shape: f32[3,4], index: 1, kind: input, shape index: {}]   ;;  %s966_s2 = inlined_call_operand.vmem [shape: f32[3], index: 2, kind: input, shape index: {}]   ;;  %s967_s3 = inlined_call_operand.hbm [shape: f32[2,3,2,128], index: 3, kind: output, shape index: {}]  }
   0x1   :  { %10 = vsyncpa [#allocation3 + $0x1], 0 }
   0x2   :  { %11 = vsyncpa [#allocation5], 0 }
   0x3   :  { %12 = vsyncpa [#allocation6], 0 }
   0x4   :  { %13 = vsyncpa [#allocation4], 0 }
   0x5   :  { %15 = vsyncpa [#allocation4 + $0x1], 0  ;;  %s723_s12 = smov 0   ;;  %s725_s13 = smov 0  }
   0x6   :  { %s727_s14 = smov 0   ;;  %s729_s15 = smov 0  }
   0x7   :  { %s731_s16 = smov 0   ;;  %s733_s17 = smov 0  }
   0x8 LB: > { %s421_s18 = sadd.s32 4294967295, %s693_s17   ;;  %s422_s19 = sadd.s32 4294967294, %s693_s17   ;;  %s693_s17 = sphi %s733_s17, %s21_s17   ;;  %s689_s16 = sphi %s731_s16, %s988_s16   ;;  %s685_s15 = sphi %s729_s15, %s987_s15   ;;  %s681_s14 = sphi %s727_s14, %s986_s14   ;;  %s677_s13 = sphi %s725_s13, %s985_s13   ;;  %s673_s12 = sphi %s723_s12, %s984_s12  }
   0x9   : > { %s42_s20 = sadd.s32 1, %s681_s14  ;;  %p49_p0 = scmp.ne.s32.totalorder %s681_s14, %s677_s13 }
   0xa   : > { %p50_p1 = scmp.eq.s32.totalorder %s693_s17, 0  ;;  %p55_p2 = scmp.ne.s32.totalorder %s677_s13, %s673_s12 }
   0xb   : > { %p761_p3 = scmp.eq.s32.totalorder %s421_s18, 0  ;;  %p123_p4 = scmp.eq.s32.totalorder %s421_s18, 1 }
   0xc   : > { %p51_p5 = por %p50_p1, %p49_p0  ;;  %p129_p6 = scmp.eq.s32.totalorder %s422_s19, 1 }
   0xd   : > { %s972_s21 = scalar_select %p761_p3, 1, 0 }
   0xe   : > { %p767_p7 = por %p761_p3, %p55_p2  ;;  %p771_p8 = por %p123_p4, %p49_p0 }
   0xf   : > { %p775_p9 = por %p129_p6, %p55_p2  ;;  %p423_p10 = scmp.ge.s32.totalorder %s693_s17, 1 }
  0x10   : > { %s973_s22 = scalar_select %p767_p7, 1, 0 }
  0x11   : > { %s974_s23 = scalar_select %p771_p8, 1, 0 }
  0x12   : > { %s975_s24 = scalar_select %p775_p9, 1, 0 }
  0x13   : > { %p136_p11 = scmp.lt.s32.totalorder %s693_s17, 3  ;;  %p487_p1 = scmp.lt.s32.totalorder %s693_s17, 2 }
  0x14   : > { %s158_s28 = sshll.u32 %s966_s2, 4  ;;  %s169_s4 = sand.u32 1, %s681_s14   ;;  %s159_s28 = int_to_ptr.vmem [resolvable:$true] %s158_s28 }
  0x15   : > { %p782_p13 = pnand %p423_p10, %p136_p11  ;;  %p792_p4 = pnand %p487_p1, %p51_p5 }
  0x16   : > { %s33_s5 = sadd.s32 1, %s689_s16  ;;  %s545_s8 = scalar_lea.hbm %s965_s1, 64 }
  0x17   : > { %p470_p0 = pneg %p782_p13  ;;  %p546_p5 = scmp.ne.s32.totalorder %s965_s1, %s545_s8 }
  0x18   : > { %p552_p1 = scmp.lt.u32.totalorder %s545_s8, %s965_s1 }
  0x19   : > { %p798_p2 = pnand %p470_p0, %p761_p3 }
  0x1b   : > { %p547_p6 = pneg %p798_p2 }
  0x1d   : > { %p548_p10 = pnand %p547_p6, %p546_p5 }
  0x1f   : > { %p549_p11 = pneg %p548_p10 }
  0x21   : > { %p554_p0 = pnand %p552_p1, %p549_p11 }
  0x23   : > { %557 = shalt.err (!%p554_p0)
}
  0x24   : > { %s695_s19 = smov [#allocation7]   ;;  %s558_s6 = scalar_lea.vmem %s159_s28, 16 }
  0x25   : > { %473 = dma.hbm_to_smem (!%p798_p2), %s965_s1, 64, %s695_s19, [#allocation5]  }
  0x26   : > { %p559_p12 = scmp.ne.s32.totalorder %s159_s28, %s558_s6  ;;  %p566_p3 = scmp.lt.s32.totalorder %s159_s28, %s159_s28 }
  0x27   : > { %p567_p5 = scmp.lt.s32.totalorder %s558_s6, %s558_s6 }
  0x28   : > { %p561_p9 = pnand %p559_p12, %p547_p6 }
  0x29   : > { %p568_p10 = por %p567_p5, %p566_p3 }
  0x2a   : > { %p562_p8 = pneg %p561_p9 }
  0x2c   : > { %p569_p7 = pnand %p568_p10, %p562_p8 }
  0x2e   : > { %572 = shalt.err (!%p569_p7)
}
  0x2f   : > { %s696_s7 = smov [#allocation8]   ;;  %p35_p11 = scmp.ge.s32.totalorder %s33_s5, 2 }
  0x30   : > { %476 = dma.vmem_to_smem (!%p798_p2), %s159_s28, 16, %s696_s7, [#allocation6]  }
  0x31   : > { %s427_s8 = sshll.u32 %s169_s4, 3  ;;  %s455_s9 = sshll.u32 %s689_s16, 7 }
  0x32   : > { %s990_s5 = smov (%p35_p11, %s33_s5), 0  ;;  %s830_s30 = scalar_lea.hbm %s964_s0, %s455_s9 }
  0x33   : > { %s37_s18 = ssub.s32 %s689_s16, %s990_s5  ;;  %s173_s19 = scalar_lea.vmem [#allocation2], %s427_s8 }
  0x34   : > { %s181_s28 = sshll.u32 %s173_s19, 4  ;;  %p40_p3 = scmp.eq.s32.totalorder %s37_s18, 0  ;;  %s834_s28 = int_to_ptr.vmem [resolvable:$true] %s181_s28 }
  0x35   : > { %s843_s27 = scalar_lea.sflag [#allocation3], %s169_s4  ;;  %s573_s6 = scalar_lea.hbm %s830_s30, 128 }
  0x36   : > { %s839_s26 = scalar_select %p40_p3, %s681_s14, %s42_s20  }
  0x37   : > { %p574_p7 = scmp.ne.s32.totalorder %s830_s30, %s573_s6  ;;  %p575_p8 = pneg %p792_p4 }
  0x38   : > { %s578_s9 = scalar_lea.hbm %s964_s0, 256  ;;  %p579_p2 = scmp.lt.u32.totalorder %s830_s30, %s964_s0 }
  0x39   : > { %p576_p9 = pnand %p575_p8, %p574_p7  ;;  %p580_p6 = scmp.lt.u32.totalorder %s578_s9, %s573_s6 }
  0x3a   : > { %p582_p0 = scmp.lt.u32.totalorder %s573_s6, %s830_s30 }
  0x3b   : > { %p577_p12 = pneg %p576_p9  ;;  %p581_p1 = por %p580_p6, %p579_p2 }
  0x3d   : > { %p583_p5 = por %p582_p0, %p581_p1 }
  0x3f   : > { %p584_p10 = pnand %p583_p5, %p577_p12 }
  0x41   : > { %587 = shalt.err (!%p584_p10)
}
  0x42   : > { %s588_s20 = scalar_lea.vmem %s834_s28, 128  ;;  %s697_s4 = smov [#allocation2]  }
  0x43   : > { %p589_p11 = scmp.ne.s32.totalorder %s834_s28, %s588_s20  ;;  %s593_s18 = sshll.u32 %s697_s4, 4  ;;  %s594_s18 = int_to_ptr.vmem [resolvable:$false] %s593_s18 }
  0x44   : > { %s595_s19 = scalar_lea.vmem %s594_s18, 256  ;;  %p596_p9 = scmp.lt.s32.totalorder %s834_s28, %s594_s18 }
  0x45   : > { %p591_p3 = pnand %p589_p11, %p575_p8  ;;  %p597_p2 = scmp.lt.s32.totalorder %s595_s19, %s588_s20 }
  0x47   : > { %p592_p7 = pneg %p591_p3  ;;  %p598_p6 = por %p597_p2, %p596_p9 }
  0x49   : > { %p599_p1 = pnand %p598_p6, %p592_p7 }
  0x4b   : > { %602 = shalt.err (!%p599_p1)
}
  0x4c   : > { %s698_s6 = smov 32   ;;  %s699_s7 = smov 2  }
  0x4d   : > { %480 = dma.hbm_to_vmem [thread:$0]  (!%p792_p4), %s830_s30, 128, %s834_s28, %s843_s27, %s698_s6, %s698_s6, %s699_s7  }
  0x4e   : > { %193 = sbr.rel (%p782_p13) target bundleno = 130 (0x82), region = 32  ;;  %s874_s8 = sand.u32 (!%p782_p13), 1, %s677_s13  }
  0x4f   : > { %s431_s9 = sshll.u32 (!%p782_p13), %s874_s8, 3  ;;  %s196_s10 = scalar_lea.sflag (!%p782_p13), [#allocation3], %s874_s8 }
  0x50   : > { %s199_s11 = scalar_lea.vmem (!%p782_p13), [#allocation2], %s431_s9  ;;  %p979_p8 = scmp.ne.s32.totalorder (!%p782_p13), %s973_s22, 0 }
  0x55   : > { %656 = dma.done.wait (%p979_p8), %s196_s10, 128  }
  0x56   : > { %658 = vsyncadd (%p979_p8), %s196_s10, 4294967168  ;;  %p980_p12 = scmp.ne.s32.totalorder %s972_s21, 0 }
  0x58   : > { %660 = dma.done.wait (%p980_p12), [#allocation5], 64  }
  0x59   : > { %662 = vsyncadd (%p980_p12), [#allocation5], 4294967232 }
  0x5a   : > { %664 = dma.done.wait (%p980_p12), [#allocation6], 16  }
  0x5b   : > { %666 = vsyncadd (%p980_p12), [#allocation6], 4294967280 }
  0x5c   : > { %212 = sfence }
  0x5d   : > { %s231_s25 = sld [smem:[#allocation8]]  ;;  %s439_s30 = sld [smem:[#allocation7 + $0x1]]  ;;  %v237_v0 = vld [vmem:[%s199_s11] sm:$0x3]  ;;  %v438_v1 = vld [vmem:[%s199_s11 + $0x2] sm:$0x3] }
  0x5e   : > { %s238_s29 = sld [smem:[#allocation7]]  ;;  %s443_s28 = sld [smem:[#allocation7 + $0x2]]  ;;  %v442_v5 = vld [vmem:[%s199_s11 + $0x4] sm:$0x3]  ;;  %v446_v9 = vld [vmem:[%s199_s11 + $0x6] sm:$0x3] }
  0x5f   : > { %s447_s27 = sld [smem:[#allocation7 + $0x3]]  ;;  %s890_s22 = sld [smem:[#allocation8 + $0x1]] }
  0x60   : > { %s436_s20 = sld [smem:[#allocation7 + $0x80]]  ;;  %s440_s4 = sld [smem:[#allocation7 + $0x81]] }
  0x61   : > { %s892_s18 = sld [smem:[#allocation7 + $0x82]]  ;;  %s894_s19 = sld [smem:[#allocation7 + $0x83]] }
  0x62   : > { %s896_s21 = sld [smem:[#allocation8 + $0x2]]  ;;  %s437_s6 = sld [smem:[#allocation7 + $0x100]] }
  0x63   : > { %v232_v2 = vstv %s231_s25  ;;  %v253_v4 = vstv %s439_s30  ;;  %s441_s7 = sld [smem:[#allocation7 + $0x101]]  ;;  %s898_s9 = sld [smem:[#allocation7 + $0x102]] }
  0x64   : > { %v239_v3 = vstv %s238_s29  ;;  %v254_v7 = vmul.f32 %v438_v1, %v253_v4  ;;  %v267_v8 = vstv %s443_s28  ;;  %s900_s10 = sld [smem:[#allocation7 + $0x103]]  ;;  %s456_s25 = smul.u32 6, %s874_s8 }
  0x65   : > { %v240_v6 = vmul.f32 %v239_v3, %v237_v0  ;;  %v281_v10 = vstv %s447_s27  ;;  %v268_v12 = vmul.f32 %v442_v5, %v267_v8  ;;  %v234_v14 = vstv %s890_s22  ;;  %s457_s30 = smul.u32 96, %s685_s15  ;;  %p981_p4 = scmp.ne.s32.totalorder %s974_s23, 0 }
  0x66   : > { %v282_v13 = vmul.f32 %v446_v9, %v281_v10  ;;  %v243_v15 = vstv %s436_s20  ;;  %v257_v16 = vstv %s440_s4  ;;  %s230_s11 = scalar_lea.vmem [#allocation9], %s456_s25  ;;  %s298_s20 = scalar_lea.sflag [#allocation4], %s874_s8 }
  0x67   : > { %v241_v11 = vadd.f32 %v240_v6, %v232_v2  ;;  %v244_v18 = vmul.f32 %v243_v15, %v237_v0  ;;  %v258_v19 = vmul.f32 %v438_v1, %v257_v16  ;;  %v271_v20 = vstv %s892_s18  ;;  %s312_s29 = sshll.u32 %s230_s11, 4  ;;  %s915_s22 = scalar_lea.hbm %s967_s3, %s457_s30  ;;  %s910_s29 = int_to_ptr.vmem [resolvable:$true] %s312_s29 }
  0x68   : > { %v285_v21 = vstv %s894_s19  ;;  %v236_v22 = vstv %s896_s21  ;;  %v247_v23 = vstv %s437_s6  ;;  %v272_v26 = vmul.f32 %v442_v5, %v271_v20  ;;  %s603_s4 = scalar_lea.vmem %s910_s29, 96  ;;  %s700_s15 = smov [#allocation9]  }
  0x69   : > { %v255_v17 = vadd.f32 %v254_v7, %v241_v11  ;;  %v245_v25 = vadd.f32 %v244_v18, %v234_v14  ;;  %v248_v27 = vmul.f32 %v247_v23, %v237_v0  ;;  %v286_v28 = vmul.f32 %v446_v9, %v285_v21  ;;  %p604_p13 = scmp.ne.s32.totalorder %s910_s29, %s603_s4  ;;  %s607_s18 = sshll.u32 %s700_s15, 4  ;;  %s608_s18 = int_to_ptr.vmem [resolvable:$false] %s607_s18 }
  0x6a   : > { %v261_v29 = vstv %s441_s7  ;;  %v275_v30 = vstv %s898_s9  ;;  %v289_v31 = vstv %s900_s10  ;;  %s609_s19 = scalar_lea.vmem %s608_s18, 192  ;;  %p610_p10 = scmp.lt.s32.totalorder %s910_s29, %s608_s18 }
  0x6b   : > { %v269_v24 = vadd.f32 %v268_v12, %v255_v17  ;;  %v259_v33 = vadd.f32 %v258_v19, %v245_v25  ;;  %v249_v34 = vadd.f32 %v248_v27, %v236_v22  ;;  %v262_v35 = vmul.f32 %v438_v1, %v261_v29  ;;  %p605_p0 = pnand %p604_p13, %p981_p4  ;;  %p611_p11 = scmp.lt.s32.totalorder %s609_s19, %s603_s4 }
  0x6c   : > { %v276_v36 = vmul.f32 %v442_v5, %v275_v30  ;;  %v290_v39 = vmul.f32 %v446_v9, %v289_v31 }
  0x6d   : > { %v283_v32 = vadd.f32 %v282_v13, %v269_v24  ;;  %v273_v37 = vadd.f32 %v272_v26, %v259_v33  ;;  %v263_v38 = vadd.f32 %v262_v35, %v249_v34  ;;  %p606_p5 = pneg %p605_p0  ;;  %p612_p3 = por %p611_p11, %p610_p10 }
  0x6f   : > { %292 = vst [vmem:[%s230_s11] sm:$0x3] %v283_v32  ;;  %v287_v40 = vadd.f32 %v286_v28, %v273_v37  ;;  %v277_v41 = vadd.f32 %v276_v36, %v263_v38  ;;  %p613_p7 = pnand %p612_p3, %p606_p5 }
  0x71   : > { %450 = vst [vmem:[%s230_s11 + $0x2] sm:$0x3] %v287_v40  ;;  %v291_v42 = vadd.f32 %v290_v39, %v277_v41 }
  0x73   : > { %451 = vst [vmem:[%s230_s11 + $0x4] sm:$0x3] %v291_v42 }
  0x74   : > { %616 = shalt.err (!%p613_p7)
}
  0x75   : > { %s617_s21 = scalar_lea.hbm %s915_s22, 96  ;;  %s621_s9 = scalar_lea.hbm %s967_s3, 192 }
  0x76   : > { %p618_p9 = scmp.ne.s32.totalorder %s915_s22, %s617_s21  ;;  %p622_p1 = scmp.lt.u32.totalorder %s915_s22, %s967_s3 }
  0x77   : > { %p623_p8 = scmp.lt.u32.totalorder %s621_s9, %s617_s21  ;;  %p625_p13 = scmp.lt.u32.totalorder %s617_s21, %s915_s22 }
  0x78   : > { %p619_p2 = pnand %p618_p9, %p981_p4 }
  0x79   : > { %p624_p12 = por %p623_p8, %p622_p1 }
  0x7a   : > { %p620_p6 = pneg %p619_p2 }
  0x7b   : > { %p626_p0 = por %p625_p13, %p624_p12 }
  0x7d   : > { %p627_p5 = pnand %p626_p0, %p620_p6 }
  0x7f   : > { %630 = shalt.err (!%p627_p5)
}
  0x80   : > { %s701_s11 = smov 32   ;;  %s702_s30 = smov 2  }
  0x81   : > { %468 = dma.vmem_to_hbm [thread:$0]  (%p981_p4), %s910_s29, 96, %s915_s22, %s298_s20, %s701_s11, %s701_s11, %s702_s30  }
  0x82 PF: > { %s327_s28 = sand.u32 1, %s673_s12   ;;  %p982_p10 = scmp.ne.s32.totalorder %s975_s24, 0 }
  0x83   : > { %p983_p11 = scmp.ge.s32.totalorder %s693_s17, 2  ;;  %s328_s27 = scalar_lea.sflag [#allocation4], %s327_s28 }
  0x85   : > { %p482_p3 = pnand %p983_p11, %p982_p10 }
  0x87   : > { %668 = dma.done.wait (!%p482_p3), %s328_s27, 96  }
  0x88   : > { %670 = vsyncadd (!%p482_p3), %s328_s27, 4294967200  ;;  %s21_s17 = sadd.s32 1, %s693_s17   ;;  %s984_s12 = smov %s677_s13 }
  0x89   : > { %p18_p7 = scmp.ge.s32.totalorder %s21_s17, 4   ;;  %s985_s13 = smov %s681_s14 }
  0x8a   : > { %s986_s14 = smov %s839_s26  ;;  %s987_s15 = smov %s689_s16 }
  0x8b   : > { %s988_s16 = smov %s990_s5  ;;  %20 = sbr.rel (!%p18_p7) target bundleno = 8 (0x8), region = 92 }
  0x92   :  { %333 = vsyncpa [#allocation3], 1 }
  0x93   :  { %335 = vsyncpa [#allocation3 + $0x1], 1 }
  0x94   :  { %336 = vsyncpa [#allocation4], 1 }
  0x95   :  { %338 = vsyncpa [#allocation4 + $0x1], 1 }
  0x96   :  { %339 = vsyncpa [#allocation5], 1 }
  0x97   :  { %341 = vsyncpa [#allocation5 + $0x1], 1 }
  0x98   :  { %342 = vsyncpa [#allocation6], 1 }
  0x99   :  { %344 = vsyncpa [#allocation6 + $0x1], 1 }

</bundles_post_ra>
